<compile_context>
chip_gen: v5e
topology: v5e:2x2
jax: 0.10.0
libtpu: 0.0.40
codegen_flags: <defaults>
</compile_context>

<pallas_src>
import jax
import jax.numpy as jnp
from jax import lax
from jax.experimental import pallas as pl
from jax.experimental.pallas import tpu as pltpu


def _leaky_relu(x, slope=0.01):
    return jnp.where(x > 0, x, slope * x)


def _round_up(x, m):
    return ((x + m - 1) // m) * m


# --------------------------------------------------------------------------
# Kernel 1: packed per-node MLP.  One grid step = one row block of z.
#   T[i_block] = leaky_relu(leaky_relu(z[i_block] @ W1p + b1p) @ W2p + b2p)
# --------------------------------------------------------------------------
def mlp_kernel(z_ref, w1_ref, b1_ref, w2_ref, b2_ref, t_ref):
    z = z_ref[...]                                                     # (TM, D)
    h = jnp.dot(z, w1_ref[...], preferred_element_type=jnp.float32) + b1_ref[...]
    h = _leaky_relu(h)                                                 # (TM, H1P)
    t = jnp.dot(h, w2_ref[...], preferred_element_type=jnp.float32) + b2_ref[...]
    t_ref[...] = _leaky_relu(t)                                        # (TM, H2P)


# --------------------------------------------------------------------------
# Kernel 2: tiled Gram matrix.  One grid step = one (TM, TN) output tile.
#   out[i, j] = T[i_block] @ T[j_block].T   (contraction on last dims, no .T)
# --------------------------------------------------------------------------
def gram_kernel(t_row_ref, t_col_ref, out_ref):
    out_ref[...] = lax.dot_general(
        t_row_ref[...], t_col_ref[...],
        dimension_numbers=(((1,), (1,)), ((), ())),
        preferred_element_type=jnp.float32)


def _pick_tile(n, want):
    if want is not None:
        assert n % want == 0, "tile must divide N"
        return want
    for t in (512, 256, 128):
        if n % t == 0:
            return t
    return n  # small / odd N: single full-extent block


def maped_inner_product_decoder(z, w1, b1, w2, b2, tile_m=None, tile_n=None):
    """z: (N, D); w1: (R, D, H1); b1: (R, 1, H1); w2: (R, H1, H2); b2: (R, 1, H2)."""
    z = z.astype(jnp.float32)
    N, D = z.shape
    R, _, H1 = w1.shape
    _, _, H2 = w2.shape

    # ---- pack all relations into one lane-dense MLP (>=128-lane outputs) ----
    H1P = max(128, _round_up(R * H1, 128))
    H2P = max(128, _round_up(R * H2, 128))

    w1p = jnp.zeros((D, H1P), jnp.float32)
    b1p = jnp.zeros((1, H1P), jnp.float32)
    w2p = jnp.zeros((H1P, H2P), jnp.float32)   # block-diagonal over relations
    b2p = jnp.zeros((1, H2P), jnp.float32)
    for r in range(R):
        w1p = w1p.at[:, r * H1:(r + 1) * H1].set(w1[r].astype(jnp.float32))
        b1p = b1p.at[:, r * H1:(r + 1) * H1].set(b1[r].astype(jnp.float32))
        w2p = w2p.at[r * H1:(r + 1) * H1, r * H2:(r + 1) * H2].set(
            w2[r].astype(jnp.float32))
        b2p = b2p.at[:, r * H2:(r + 1) * H2].set(b2[r].astype(jnp.float32))

    tm = _pick_tile(N, tile_m)
    tn = _pick_tile(N, tile_n)

    # ---- stage 1: T = concat_r mlp_r(z), computed once, row-tiled -----------
    t_mat = pl.pallas_call(
        mlp_kernel,
        out_shape=jax.ShapeDtypeStruct((N, H2P), jnp.float32),
        grid_spec=pltpu.PrefetchScalarGridSpec(
            num_scalar_prefetch=0,
            grid=(N // tm,),
            in_specs=[
                pl.BlockSpec((tm, D), lambda i: (i, 0)),      # z row block
                pl.BlockSpec((D, H1P), lambda i: (0, 0)),     # packed W1
                pl.BlockSpec((1, H1P), lambda i: (0, 0)),     # packed b1
                pl.BlockSpec((H1P, H2P), lambda i: (0, 0)),   # block-diag W2
                pl.BlockSpec((1, H2P), lambda i: (0, 0)),     # packed b2
            ],
            out_specs=pl.BlockSpec((tm, H2P), lambda i: (i, 0)),
        ),
        compiler_params=pltpu.CompilerParams(
            dimension_semantics=("parallel",),
        ),
        cost_estimate=pl.CostEstimate(
            flops=2 * N * D * H1P + 2 * N * H1P * H2P,
            transcendentals=0,
            bytes_accessed=4 * (N * D + N * H2P + D * H1P + H1P * H2P
                                + H1P + H2P),
        ),
    )(z, w1p, b1p, w2p, b2p)

    # ---- stage 2: out = T @ T.T, tiled over (i, j), both axes parallel ------
    # TODO(synk): output is symmetric; computing only j >= i tiles and mirroring
    #             would halve MXU flops and HBM writeback.
    out = pl.pallas_call(
        gram_kernel,
        out_shape=jax.ShapeDtypeStruct((N, N), jnp.float32),
        grid_spec=pltpu.PrefetchScalarGridSpec(
            num_scalar_prefetch=0,
            grid=(N // tm, N // tn),
            in_specs=[
                pl.BlockSpec((tm, H2P), lambda i, j: (i, 0)),  # T row block
                pl.BlockSpec((tn, H2P), lambda i, j: (j, 0)),  # T col block
            ],
            out_specs=pl.BlockSpec((tm, tn), lambda i, j: (i, j)),
        ),
        compiler_params=pltpu.CompilerParams(
            dimension_semantics=("parallel", "parallel"),
        ),
        cost_estimate=pl.CostEstimate(
            flops=2 * N * N * H2P,
            transcendentals=0,
            bytes_accessed=4 * (N * N + 2 * N * H2P),
        ),
    )(t_mat, t_mat)
    return out


def reference(z, w1, b1, w2, b2):
    """Pure-JAX reference reproducing the PyTorch forward (per-relation loop)."""
    out = jnp.zeros((z.shape[0], z.shape[0]), jnp.float32)
    for r in range(w1.shape[0]):
        h = _leaky_relu(z @ w1[r] + b1[r])
        t = _leaky_relu(h @ w2[r] + b2[r])
        out = out + t @ t.T
    return out


if __name__ == "__main__":
    # Small shapes consistent with the module: N nodes, in_size features,
    # layers = [H1, H2], num_of_relations = R.
    N, D_IN = 256, 32
    H1, H2 = 32, 16
    R = 3

    key = jax.random.PRNGKey(0)
    kz, k1, k2, k3, k4 = jax.random.split(key, 5)

    z = jax.random.normal(kz, (N, D_IN), dtype=jnp.float32)
    w1 = jax.random.normal(k1, (R, D_IN, H1), dtype=jnp.float32) * (1.0 / jnp.sqrt(D_IN))
    b1 = jax.random.normal(k2, (R, 1, H1), dtype=jnp.float32) * 0.01
    w2 = jax.random.normal(k3, (R, H1, H2), dtype=jnp.float32) * (1.0 / jnp.sqrt(H1))
    b2 = jax.random.normal(k4, (R, 1, H2), dtype=jnp.float32) * 0.01

    # tile 128 -> grid (2, 2) to exercise the tiled / parallel path.
    out = maped_inner_product_decoder(z, w1, b1, w2, b2, tile_m=128, tile_n=128)
    out = jax.block_until_ready(out)

    ref = reference(z, w1, b1, w2, b2)
    assert out.shape == (N, N)
    assert jnp.allclose(out, ref, atol=2e-3, rtol=1e-4), "mismatch vs reference"

    print("KERNEL_OK")
</pallas_src>

<mosaic_0001>
module attributes {stable_mosaic.version = 11 : i64} {
  func.func @mlp_kernel(%arg0: i32, %arg1: memref<128x32xf32, #tpu.memory_space<vmem>>, %arg2: memref<32x128xf32, #tpu.memory_space<vmem>>, %arg3: memref<1x128xf32, #tpu.memory_space<vmem>>, %arg4: memref<128x128xf32, #tpu.memory_space<vmem>>, %arg5: memref<1x128xf32, #tpu.memory_space<vmem>>, %arg6: memref<128x128xf32, #tpu.memory_space<vmem>>) attributes {dimension_semantics = [#tpu.dimension_semantics<parallel>], iteration_bounds = array<i64: 2>, scalar_prefetch = 0 : i64, scratch_operands = 0 : i64, tpu.core_type = #tpu.core_type<tc>, window_params = [{transform_indices = @transform_0, window_bounds = array<i64: 128, 32>}, {pipeline_mode = #tpu.pipeline_mode<synchronous>, transform_indices = @transform_1, window_bounds = array<i64: 32, 128>}, {pipeline_mode = #tpu.pipeline_mode<synchronous>, transform_indices = @transform_2, window_bounds = array<i64: 1, 128>}, {pipeline_mode = #tpu.pipeline_mode<synchronous>, transform_indices = @transform_3, window_bounds = array<i64: 128, 128>}, {pipeline_mode = #tpu.pipeline_mode<synchronous>, transform_indices = @transform_4, window_bounds = array<i64: 1, 128>}, {transform_indices = @transform_5, window_bounds = array<i64: 128, 128>}]} {
    %c0 = arith.constant 0 : index
    %c0_0 = arith.constant 0 : index
    %0 = vector.load %arg1[%c0, %c0_0] : memref<128x32xf32, #tpu.memory_space<vmem>>, vector<128x32xf32>
    %c0_1 = arith.constant 0 : index
    %c0_2 = arith.constant 0 : index
    %1 = vector.load %arg2[%c0_1, %c0_2] : memref<32x128xf32, #tpu.memory_space<vmem>>, vector<32x128xf32>
    %cst = arith.constant dense<0.000000e+00> : vector<128x128xf32>
    %2 = tpu.matmul %0, %1, %cst {dimension_numbers = #tpu.dot_dimension_numbers<[1], [0], [0], [1], [0, 0, 1, 1], [], []>} : vector<128x32xf32>, vector<32x128xf32>, vector<128x128xf32> -> vector<128x128xf32>
    %c0_3 = arith.constant 0 : index
    %c0_4 = arith.constant 0 : index
    %3 = vector.load %arg3[%c0_3, %c0_4] : memref<1x128xf32, #tpu.memory_space<vmem>>, vector<1x128xf32>
    %4 = vector.broadcast %3 : vector<1x128xf32> to vector<128x128xf32>
    %5 = arith.addf %2, %4 : vector<128x128xf32>
    %cst_5 = arith.constant 0.000000e+00 : f32
    %6 = vector.broadcast %cst_5 : f32 to vector<128x128xf32>
    %7 = arith.cmpf ogt, %5, %6 : vector<128x128xf32>
    %cst_6 = arith.constant 0.00999999977 : f32
    %8 = vector.broadcast %cst_6 : f32 to vector<128x128xf32>
    %9 = arith.mulf %8, %5 : vector<128x128xf32>
    %10 = arith.select %7, %5, %9 : vector<128x128xi1>, vector<128x128xf32>
    %c0_7 = arith.constant 0 : index
    %c0_8 = arith.constant 0 : index
    %11 = vector.load %arg4[%c0_7, %c0_8] : memref<128x128xf32, #tpu.memory_space<vmem>>, vector<128x128xf32>
    %cst_9 = arith.constant dense<0.000000e+00> : vector<128x128xf32>
    %12 = tpu.matmul %10, %11, %cst_9 {dimension_numbers = #tpu.dot_dimension_numbers<[1], [0], [0], [1], [0, 0, 1, 1], [], []>} : vector<128x128xf32>, vector<128x128xf32>, vector<128x128xf32> -> vector<128x128xf32>
    %c0_10 = arith.constant 0 : index
    %c0_11 = arith.constant 0 : index
    %13 = vector.load %arg5[%c0_10, %c0_11] : memref<1x128xf32, #tpu.memory_space<vmem>>, vector<1x128xf32>
    %14 = vector.broadcast %13 : vector<1x128xf32> to vector<128x128xf32>
    %15 = arith.addf %12, %14 : vector<128x128xf32>
    %cst_12 = arith.constant 0.000000e+00 : f32
    %16 = vector.broadcast %cst_12 : f32 to vector<128x128xf32>
    %17 = arith.cmpf ogt, %15, %16 : vector<128x128xf32>
    %cst_13 = arith.constant 0.00999999977 : f32
    %18 = vector.broadcast %cst_13 : f32 to vector<128x128xf32>
    %19 = arith.mulf %18, %15 : vector<128x128xf32>
    %20 = arith.select %17, %15, %19 : vector<128x128xi1>, vector<128x128xf32>
    %c0_14 = arith.constant 0 : index
    %c0_15 = arith.constant 0 : index
    %21 = vector.load %arg6[%c0_14, %c0_15] : memref<128x128xf32, #tpu.memory_space<vmem>>, vector<128x128xf32>
    tpu.vector_store %arg6[%c0_14, %c0_15], %20 {strides = array<i32>} : memref<128x128xf32, #tpu.memory_space<vmem>>, vector<128x128xf32>,
    return
  }
  func.func @transform_0(%arg0: i32) -> (i32, i32) {
    %c0_i32 = arith.constant 0 : i32
    %c0_i32_0 = arith.constant 0 : i32
    return %arg0, %c0_i32 : i32, i32
  }
  func.func @transform_1(%arg0: i32) -> (i32, i32) {
    %c0_i32 = arith.constant 0 : i32
    %c0_i32_0 = arith.constant 0 : i32
    %c0_i32_1 = arith.constant 0 : i32
    return %c0_i32, %c0_i32_0 : i32, i32
  }
  func.func @transform_2(%arg0: i32) -> (i32, i32) {
    %c0_i32 = arith.constant 0 : i32
    %c0_i32_0 = arith.constant 0 : i32
    %c0_i32_1 = arith.constant 0 : i32
    return %c0_i32, %c0_i32_0 : i32, i32
  }
  func.func @transform_3(%arg0: i32) -> (i32, i32) {
    %c0_i32 = arith.constant 0 : i32
    %c0_i32_0 = arith.constant 0 : i32
    %c0_i32_1 = arith.constant 0 : i32
    return %c0_i32, %c0_i32_0 : i32, i32
  }
  func.func @transform_4(%arg0: i32) -> (i32, i32) {
    %c0_i32 = arith.constant 0 : i32
    %c0_i32_0 = arith.constant 0 : i32
    %c0_i32_1 = arith.constant 0 : i32
    return %c0_i32, %c0_i32_0 : i32, i32
  }
  func.func @transform_5(%arg0: i32) -> (i32, i32) {
    %c0_i32 = arith.constant 0 : i32
    %c0_i32_0 = arith.constant 0 : i32
    return %arg0, %c0_i32 : i32, i32
  }
}

</mosaic_0001>

<bundles_post_ra>
// kernel: tpu_custom_call.1
= control target key start
LH: loop header
LB: loop body
LE: loop exit
PB: predicated region body
PF: predicated region fallthrough
CT: control target
= control target key end

     0   :  { %10 = vsyncpa [#allocation3], 0  ;;  %s1086_s0 = inlined_call_operand.vmem [shape: f32[256,32], index: 0, kind: input, shape index: {}]   ;;  %s1087_s1 = inlined_call_operand.vmem [shape: f32[32,128], index: 1, kind: input, shape index: {}]   ;;  %s1088_s2 = inlined_call_operand.vmem [shape: f32[1,128], index: 2, kind: input, shape index: {}]   ;;  %s1089_s3 = inlined_call_operand.vmem [shape: f32[128,128], index: 3, kind: input, shape index: {}]   ;;  %s1090_s4 = inlined_call_operand.vmem [shape: f32[1,128], index: 4, kind: input, shape index: {}]   ;;  %s1091_s5 = inlined_call_operand.hbm [shape: f32[256,128], index: 5, kind: output, shape index: {}]  }
   0x1   :  { %12 = vsyncpa [#allocation3 + $0x1], 0  ;;  %s843_s18 = smov 0   ;;  %s845_s19 = smov 0  }
   0x2   :  { %s847_s20 = smov 0   ;;  %s849_s21 = smov 0  }
   0x3 LB: > { %s864_s22 = sadd.s32 4294967295, %s809_s21   ;;  %s639_s23 = sadd.s32 4294967294, %s809_s21   ;;  %s809_s21 = sphi %s849_s21, %s1097_s21   ;;  %s805_s20 = sphi %s847_s20, %s1096_s20   ;;  %s801_s19 = sphi %s845_s19, %s1095_s19   ;;  %s797_s18 = sphi %s843_s18, %s1094_s18  }
   0x4   : > { %s868_s24 = sadd.s32 1, %s809_s21   ;;  %s135_s25 = sadd.s32 1, %s805_s20 }
   0x5   : > { %s132_s26 = ssub.s32 %s809_s21, %s868_s24  ;;  %p145_p0 = scmp.ne.s32.totalorder %s805_s20, %s801_s19 }
   0x6   : > { %p133_p1 = scmp.eq.s32.totalorder %s132_s26, 0  ;;  %p146_p2 = scmp.eq.s32.totalorder %s864_s22, 1 }
   0x7   : > { %p151_p3 = scmp.ne.s32.totalorder %s801_s19, %s797_s18  ;;  %p152_p4 = scmp.eq.s32.totalorder %s639_s23, 1 }
   0x8   : > { %s879_s27 = scalar_select %p133_p1, %s805_s20, %s135_s25  }
   0x9   : > { %p881_p5 = por %p146_p2, %p145_p0  ;;  %p885_p6 = por %p152_p4, %p151_p3 }
   0xa   : > { %p642_p7 = scmp.ge.s32.totalorder %s809_s21, 1  ;;  %p191_p8 = scmp.lt.s32.totalorder %s809_s21, 3 }
   0xc   : > { %p192_p9 = pnand %p642_p7, %p191_p8 }
   0xd   : > { %s644_s9 = sshll.u32 (!%p192_p9), %s864_s22, 4  ;;  %s216_s30 = sand.u32 (!%p192_p9), 1, %s801_s19  }
   0xe   : > { %195 = sbr.rel (%p192_p9) target bundleno = 403 (0x193), region = 40  ;;  %p220_p10 = scmp.lt.s32.totalorder (!%p192_p9), %s644_s9, 31 }
   0xf   : > { %s643_s8 = sshll.u32 (!%p192_p9), %s216_s30, 7  ;;  %s667_s10 = sshll.u32 (!%p192_p9), %s864_s22, 7 }
  0x10   : > { %s573_s13 = scalar_lea.hbm (!%p192_p9), %s1091_s5, %s667_s10  ;;  %s562_s22 = scalar_lea.sflag (!%p192_p9), [#allocation3], %s216_s30 }
  0x11   : > { %s576_s15 = sshll.u32 (!%p192_p9), %s573_s13, 4  ;;  %s767_s26 = scalar_lea.hbm (!%p192_p9), %s1091_s5, 256  ;;  %s577_s15 = int_to_ptr.hbm [resolvable:$true] %s576_s15 }
  0x12   : > { %s761_s16 = sshra.s32 (!%p192_p9), %s577_s15, 4  ;;  %s762_s16 = int_to_ptr.hbm [resolvable:$true] %s761_s16 }
  0x13   : > { %v245_v0 = vld [vmem:[%s1087_s1 + $0x18] sm:$0xff]  ;;  %v244_v1 = vld [vmem:[%s1087_s1 + $0x10] sm:$0xff]  ;;  %v243_v2 = vld [vmem:[%s1087_s1 + $0x8] sm:$0xff]  ;;  %s1099_s9 = smov (!%p220_p10, %s644_s9), 31  ;;  %vm250_vm0 = vcmask 261120   ;;  %s763_s23 = scalar_lea.hbm %s762_s16, 128 }
  0x14   : > { %311 = vmatpush.msra.mxu0 %v245_v0  ;;  %668 = vmatpush.msra.mxu3 %v245_v0  ;;  %v242_v3 = vld [vmem:[%s1087_s1] sm:$0xff]  ;;  %s645_s14 = sshll.u32 %s1099_s9, 3  ;;  %v427_v14 = vld [vmem:[%s1089_s3 + $0x78] sm:$0xff]  ;;  %v426_v15 = vld [vmem:[%s1089_s3 + $0x70] sm:$0xff]  ;;  %s1019_s9 = scalar_lea.vmem [#allocation2], %s643_s8 }
  0x15   : > { %s907_s17 = scalar_lea.vmem %s1086_s0, %s645_s14  ;;  %432 = vmatpush.msra.mxu1 %v427_v14  ;;  %672 = vmatpush.msra.mxu2 %v427_v14  ;;  %v425_v16 = vld [vmem:[%s1089_s3 + $0x68] sm:$0xff]  ;;  %v424_v18 = vld [vmem:[%s1089_s3 + $0x60] sm:$0xff]  ;;  %v423_v20 = vld [vmem:[%s1089_s3 + $0x58] sm:$0xff]  ;;  %s574_s14 = sshll.u32 %s1019_s9, 4  ;;  %s575_s14 = int_to_ptr.vmem [resolvable:$true] %s574_s14 }
  0x16   : > { %312 = vmatpush.msra.mxu0 %v244_v1  ;;  %669 = vmatpush.msra.mxu3 %v244_v1  ;;  %v226_v4 = vld [vmem:[%s907_s17] sm:$0xff]  ;;  %v227_v5 = vld [vmem:[%s907_s17 + $0x8] sm:$0xff]  ;;  %v228_v6 = vld [vmem:[%s907_s17 + $0x10] sm:$0xff]  ;;  %p764_p11 = scmp.ne.s32.totalorder %s762_s16, %s763_s23  ;;  %p768_p0 = scmp.lt.s32.totalorder %s762_s16, %s1091_s5 }
  0x17   : > { %v236_v7 = vld [vmem:[%s907_s17 + $0x50] sm:$0xff]  ;;  %v229_v8 = vld [vmem:[%s907_s17 + $0x18] sm:$0xff]  ;;  %v230_v10 = vld [vmem:[%s907_s17 + $0x20] sm:$0xff]  ;;  %433 = vmatpush.msra.mxu1 %v426_v15  ;;  %674 = vmatpush.msra.mxu2 %v426_v15  ;;  %p769_p1 = scmp.lt.s32.totalorder %s767_s26, %s763_s23 }
  0x18   : > { %313 = vmatpush.msra.mxu0 %v243_v2  ;;  %670 = vmatpush.msra.mxu3 %v243_v2  ;;  %v237_v9 = vld [vmem:[%s907_s17 + $0x58] sm:$0xff]  ;;  %v238_v11 = vld [vmem:[%s907_s17 + $0x60] sm:$0xff]  ;;  %v231_v12 = vld [vmem:[%s907_s17 + $0x28] sm:$0xff]  ;;  %p765_p12 = pnand %p764_p11, %p881_p5 }
  0x19   : > { %v239_v13 = vld [vmem:[%s907_s17 + $0x68] sm:$0xff]  ;;  %v232_v17 = vld [vmem:[%s907_s17 + $0x30] sm:$0xff]  ;;  %434 = vmatpush.msra.mxu1 %v425_v16  ;;  %676 = vmatpush.msra.mxu2 %v425_v16  ;;  %v233_v23 = vld [vmem:[%s907_s17 + $0x38] sm:$0xff]  ;;  %p770_p2 = por %p769_p1, %p768_p0 }
  0x1a   : > { %314 = vmatpush.msra.mxu0 %v242_v3  ;;  %671 = vmatpush.msra.mxu3 %v242_v3  ;;  %v240_v19 = vld [vmem:[%s907_s17 + $0x70] sm:$0xff]  ;;  %v421_v22 = vld [vmem:[%s1089_s3 + $0x48] sm:$0xff]  ;;  %v420_v24 = vld [vmem:[%s1089_s3 + $0x40] sm:$0xff]  ;;  %p766_p13 = pneg %p765_p12 }
  0x1b   : > { %646 = vmatmul.msk.f32.vlgmr.msra.gmra.mxu0 %vm250_vm0, %v226_v4  ;;  %656 = vmatmul.msk.f32.vlgmr.msra.gmra.mxu3 %vm250_vm0, %v236_v7  ;;  %v422_v21 = vld [vmem:[%s1089_s3 + $0x50] sm:$0xff]  ;;  %v241_v25 = vld [vmem:[%s907_s17 + $0x78] sm:$0xff]  ;;  %v417_v28 = vld [vmem:[%s1089_s3 + $0x28] sm:$0xff] }
  0x1c   : > { %673 = vmatpush.msrb.mxu3 %v427_v14  ;;  %435 = vmatpush.msra.mxu1 %v424_v18  ;;  %v419_v26 = vld [vmem:[%s1089_s3 + $0x38] sm:$0xff]  ;;  %v418_v27 = vld [vmem:[%s1089_s3 + $0x30] sm:$0xff]  ;;  %v234_v29 = vld [vmem:[%s907_s17 + $0x40] sm:$0xff]  ;;  %p771_p3 = pnand %p770_p2, %p766_p13 }
  0x1d   : > { %678 = vmatpush.msra.mxu2 %v424_v18  ;;  %v416_v30 = vld [vmem:[%s1089_s3 + $0x20] sm:$0xff]  ;;  %v415_v31 = vld [vmem:[%s1089_s3 + $0x18] sm:$0xff]  ;;  %v235_v32 = vld [vmem:[%s907_s17 + $0x48] sm:$0xff] }
  0x1e   : > { %675 = vmatpush.msrb.mxu3 %v426_v15  ;;  %436 = vmatpush.msra.mxu1 %v423_v20  ;;  %v414_v33 = vld [vmem:[%s1089_s3 + $0x10] sm:$0xff]  ;;  %v413_v34 = vld [vmem:[%s1089_s3 + $0x8] sm:$0xff]  ;;  %v412_v35 = vld [vmem:[%s1089_s3] sm:$0xff] }
  0x1f   : > { %680 = vmatpush.msra.mxu2 %v423_v20  ;;  %v992_v36 = vld [vmem:[%s1088_s2] ss:$0 sm:$0xff] }
  0x20   : > { %677 = vmatpush.msrb.mxu3 %v425_v16  ;;  %437 = vmatpush.msra.mxu1 %v422_v21 }
  0x21   : > { %682 = vmatpush.msra.mxu2 %v422_v21 }
  0x22   : > { %679 = vmatpush.msrb.mxu3 %v424_v18  ;;  %438 = vmatpush.msra.mxu1 %v421_v22 }
  0x23   : > { %647 = vmatmul.msk.f32.gmra.mxu0 %vm250_vm0, %v227_v5  ;;  %657 = vmatmul.msk.f32.gmra.mxu3 %vm250_vm0, %v237_v9 }
  0x24   : > { %681 = vmatpush.msrb.mxu3 %v423_v20  ;;  %684 = vmatpush.msra.mxu2 %v421_v22 }
  0x25   : > { %439 = vmatpush.msra.mxu1 %v420_v24 }
  0x26   : > { %683 = vmatpush.msrb.mxu3 %v422_v21  ;;  %686 = vmatpush.msra.mxu2 %v420_v24 }
  0x27   : > { %440 = vmatpush.msra.mxu1 %v419_v26 }
  0x28   : > { %685 = vmatpush.msrb.mxu3 %v421_v22  ;;  %688 = vmatpush.msra.mxu2 %v419_v26 }
  0x29   : > { %441 = vmatpush.msra.mxu1 %v418_v27 }
  0x2a   : > { %687 = vmatpush.msrb.mxu3 %v420_v24  ;;  %690 = vmatpush.msra.mxu2 %v418_v27 }
  0x2b   : > { %648 = vmatmul.msk.f32.gmra.mxu0 %vm250_vm0, %v228_v6  ;;  %658 = vmatmul.msk.f32.gmra.mxu3 %vm250_vm0, %v238_v11 }
  0x2c   : > { %442 = vmatpush.msra.mxu1 %v417_v28  ;;  %689 = vmatpush.msrb.mxu3 %v419_v26 }
  0x2d   : > { %692 = vmatpush.msra.mxu2 %v417_v28 }
  0x2e   : > { %443 = vmatpush.msra.mxu1 %v416_v30  ;;  %691 = vmatpush.msrb.mxu3 %v418_v27 }
  0x2f   : > { %694 = vmatpush.msra.mxu2 %v416_v30 }
  0x30   : > { %444 = vmatpush.msra.mxu1 %v415_v31  ;;  %693 = vmatpush.msrb.mxu3 %v417_v28 }
  0x31   : > { %696 = vmatpush.msra.mxu2 %v415_v31 }
  0x32   : > { %695 = vmatpush.msrb.mxu3 %v416_v30  ;;  %445 = vmatpush.msra.mxu1 %v414_v33 }
  0x33   : > { %649 = vmatmul.msk.f32.gmra.mxu0 %vm250_vm0, %v229_v8  ;;  %659 = vmatmul.msk.f32.gmra.mxu3 %vm250_vm0, %v239_v13 }
  0x34   : > { %697 = vmatpush.msrb.mxu3 %v415_v31  ;;  %698 = vmatpush.msra.mxu2 %v414_v33 }
  0x35   : > { %446 = vmatpush.msra.mxu1 %v413_v34 }
  0x36   : > { %699 = vmatpush.msrb.mxu3 %v414_v33  ;;  %700 = vmatpush.msra.mxu2 %v413_v34 }
  0x37   : > { %447 = vmatpush.msra.mxu1 %v412_v35 }
  0x38   : > { %701 = vmatpush.msrb.mxu3 %v413_v34  ;;  %702 = vmatpush.msra.mxu2 %v412_v35 }
  0x3a   : > { %703 = vmatpush.msrb.mxu3 %v412_v35 }
  0x3b   : > { %650 = vmatmul.msk.f32.gmra.mxu0 %vm250_vm0, %v230_v10  ;;  %660 = vmatmul.msk.f32.gmra.mxu3 %vm250_vm0, %v240_v19 }
  0x43   : > { %651 = vmatmul.msk.f32.gmra.mxu0 %vm250_vm0, %v231_v12  ;;  %661 = vmatmul.msk.f32.gmra.mxu3 %vm250_vm0, %v241_v25 }
  0x4b   : > { %652 = vmatmul.msk.f32.gmra.mxu0 %vm250_vm0, %v232_v17 }
  0x53   : > { %653 = vmatmul.msk.f32.gmra.mxu0 %vm250_vm0, %v233_v23 }
  0x5b   : > { %654 = vmatmul.msk.f32.gmra.mxu0 %vm250_vm0, %v234_v29 }
  0x63   : > { %655 = vmatmul.msk.f32.gmra.mxu0 %vm250_vm0, %v235_v32 }
  0x98   : > { %v316_v37 = vpop.f32.mrf.mxu0 }
  0x99   : > { %v317_v38 = vadd.f32 %v992_v36, %v316_v37 }
  0x9b   : > { %vm364_vm1 = vcmp.gt.f32.partialorder %v317_v38, 0.0  ;;  %v380_v39 = vmul.f32 0.01, %v317_v38 }
  0x9d   : > { %v396_v40 = vsel %vm364_vm1, %v317_v38, %v380_v39  ;;  %v1014_v38 = vld [vmem:[%s1090_s4] ss:$0 sm:$0xff] }
  0x9e   : > { %448 = vmatmul.f32.vlgmr.msra.gmra.mxu1 %v396_v40  ;;  %v346_v51 = vpop.f32.mrf.mxu3 }
  0x9f   : > { %v347_v24 = vadd.f32 %v992_v36, %v346_v51 }
  0xa0   : > { %v319_v41 = vpop.f32.mrf.mxu0 }
  0xa1   : > { %v320_v42 = vadd.f32 %v992_v36, %v319_v41  ;;  %v390_v26 = vmul.f32 0.01, %v347_v24  ;;  %vm374_vm13 = vcmp.gt.f32.partialorder %v347_v24, 0.0 }
  0xa3   : > { %vm365_vm2 = vcmp.gt.f32.partialorder %v320_v42, 0.0  ;;  %v381_v43 = vmul.f32 0.01, %v320_v42  ;;  %v406_v28 = vsel %vm374_vm13, %v347_v24, %v390_v26 }
  0xa5   : > { %v397_v44 = vsel %vm365_vm2, %v320_v42, %v381_v43 }
  0xa6   : > { %451 = vmatmul.f32.gmra.mxu1 %v397_v44  ;;  %v349_v56 = vpop.f32.mrf.mxu3 }
  0xa7   : > { %v350_v27 = vadd.f32 %v992_v36, %v349_v56 }
  0xa8   : > { %v322_v45 = vpop.f32.mrf.mxu0 }
  0xa9   : > { %v323_v46 = vadd.f32 %v992_v36, %v322_v45  ;;  %v391_v29 = vmul.f32 0.01, %v350_v27  ;;  %vm375_vm14 = vcmp.gt.f32.partialorder %v350_v27, 0.0 }
  0xab   : > { %vm366_vm3 = vcmp.gt.f32.partialorder %v323_v46, 0.0  ;;  %v382_v47 = vmul.f32 0.01, %v323_v46  ;;  %v407_v31 = vsel %vm375_vm14, %v350_v27, %v391_v29 }
  0xad   : > { %v398_v48 = vsel %vm366_vm3, %v323_v46, %v382_v47 }
  0xae   : > { %454 = vmatmul.f32.gmra.mxu1 %v398_v48  ;;  %v352_v61 = vpop.f32.mrf.mxu3 }
  0xaf   : > { %v353_v30 = vadd.f32 %v992_v36, %v352_v61 }
  0xb0   : > { %v325_v49 = vpop.f32.mrf.mxu0 }
  0xb1   : > { %v326_v50 = vadd.f32 %v992_v36, %v325_v49  ;;  %v392_v32 = vmul.f32 0.01, %v353_v30  ;;  %vm376_vm15 = vcmp.gt.f32.partialorder %v353_v30, 0.0 }
  0xb3   : > { %vm367_vm4 = vcmp.gt.f32.partialorder %v326_v50, 0.0  ;;  %v383_v52 = vmul.f32 0.01, %v326_v50  ;;  %v408_v34 = vsel %vm376_vm15, %v353_v30, %v392_v32 }
  0xb5   : > { %v399_v53 = vsel %vm367_vm4, %v326_v50, %v383_v52 }
  0xb6   : > { %457 = vmatmul.f32.gmra.mxu1 %v399_v53  ;;  %v355_v2 = vpop.f32.mrf.mxu3 }
  0xb7   : > { %v356_v33 = vadd.f32 %v992_v36, %v355_v2 }
  0xb8   : > { %v328_v54 = vpop.f32.mrf.mxu0 }
  0xb9   : > { %v329_v55 = vadd.f32 %v992_v36, %v328_v54  ;;  %v393_v35 = vmul.f32 0.01, %v356_v33  ;;  %vm377_vm0 = vcmp.gt.f32.partialorder %v356_v33, 0.0 }
  0xbb   : > { %vm368_vm5 = vcmp.gt.f32.partialorder %v329_v55, 0.0  ;;  %v384_v57 = vmul.f32 0.01, %v329_v55  ;;  %v409_v37 = vsel %vm377_vm0, %v356_v33, %v393_v35 }
  0xbd   : > { %v400_v58 = vsel %vm368_vm5, %v329_v55, %v384_v57 }
  0xbe   : > { %460 = vmatmul.f32.gmra.mxu1 %v400_v58  ;;  %v358_v7 = vpop.f32.mrf.mxu3 }
  0xbf   : > { %v359_v8 = vadd.f32 %v992_v36, %v358_v7 }
  0xc0   : > { %v331_v59 = vpop.f32.mrf.mxu0 }
  0xc1   : > { %v332_v60 = vadd.f32 %v992_v36, %v331_v59  ;;  %v394_v10 = vmul.f32 0.01, %v359_v8  ;;  %vm378_vm9 = vcmp.gt.f32.partialorder %v359_v8, 0.0 }
  0xc3   : > { %vm369_vm6 = vcmp.gt.f32.partialorder %v332_v60, 0.0  ;;  %v385_v62 = vmul.f32 0.01, %v332_v60  ;;  %v410_v12 = vsel %vm378_vm9, %v359_v8, %v394_v10 }
  0xc4   : > { %490 = vmatmul.f32.vlgmr.msrb.gmra.mxu3 %v410_v12 }
  0xc5   : > { %v401_v63 = vsel %vm369_vm6, %v332_v60, %v385_v62 }
  0xc6   : > { %463 = vmatmul.f32.gmra.mxu1 %v401_v63  ;;  %v361_v15 = vpop.f32.mrf.mxu3 }
  0xc7   : > { %v362_v16 = vadd.f32 %v992_v36, %v361_v15 }
  0xc8   : > { %v334_v0 = vpop.f32.mrf.mxu0 }
  0xc9   : > { %v335_v1 = vadd.f32 %v992_v36, %v334_v0  ;;  %vm379_vm11 = vcmp.gt.f32.partialorder %v362_v16, 0.0  ;;  %v395_v19 = vmul.f32 0.01, %v362_v16 }
  0xcb   : > { %vm370_vm7 = vcmp.gt.f32.partialorder %v335_v1, 0.0  ;;  %v386_v3 = vmul.f32 0.01, %v335_v1  ;;  %v411_v21 = vsel %vm379_vm11, %v362_v16, %v395_v19 }
  0xcc   : > { %493 = vmatmul.f32.gmra.mxu3 %v411_v21 }
  0xcd   : > { %v402_v4 = vsel %vm370_vm7, %v335_v1, %v386_v3 }
  0xce   : > { %466 = vmatmul.f32.gmra.mxu1 %v402_v4 }
  0xd0   : > { %v337_v5 = vpop.f32.mrf.mxu0 }
  0xd1   : > { %v338_v6 = vadd.f32 %v992_v36, %v337_v5 }
  0xd3   : > { %vm371_vm8 = vcmp.gt.f32.partialorder %v338_v6, 0.0  ;;  %v387_v9 = vmul.f32 0.01, %v338_v6 }
  0xd5   : > { %v403_v11 = vsel %vm371_vm8, %v338_v6, %v387_v9 }
  0xd6   : > { %469 = vmatmul.f32.vlgmr.msra.gmra.mxu2 %v403_v11 }
  0xd8   : > { %v340_v13 = vpop.f32.mrf.mxu0 }
  0xd9   : > { %v341_v14 = vadd.f32 %v992_v36, %v340_v13 }
  0xdb   : > { %vm372_vm10 = vcmp.gt.f32.partialorder %v341_v14, 0.0  ;;  %v388_v17 = vmul.f32 0.01, %v341_v14 }
  0xdd   : > { %v404_v18 = vsel %vm372_vm10, %v341_v14, %v388_v17 }
  0xde   : > { %472 = vmatmul.f32.gmra.mxu2 %v404_v18 }
  0xe0   : > { %v343_v20 = vpop.f32.mrf.mxu0 }
  0xe1   : > { %v344_v22 = vadd.f32 %v992_v36, %v343_v20 }
  0xe3   : > { %vm373_vm12 = vcmp.gt.f32.partialorder %v344_v22, 0.0  ;;  %v389_v23 = vmul.f32 0.01, %v344_v22 }
  0xe5   : > { %v405_v25 = vsel %vm373_vm12, %v344_v22, %v389_v23 }
  0xe6   : > { %475 = vmatmul.f32.gmra.mxu2 %v405_v25 }
  0xee   : > { %478 = vmatmul.f32.gmra.mxu2 %v406_v28 }
  0xf6   : > { %481 = vmatmul.f32.gmra.mxu2 %v407_v31 }
  0xfe   : > { %484 = vmatmul.f32.gmra.mxu2 %v408_v34 }
 0x106   : > { %487 = vmatmul.f32.gmra.mxu2 %v409_v37 }
 0x11b   : > { %v449_v39 = vpop.f32.mrf.mxu1 }
 0x11c   : > { %v450_v40 = vadd.f32 %v1014_v38, %v449_v39 }
 0x11e   : > { %vm497_vm1 = vcmp.gt.f32.partialorder %v450_v40, 0.0  ;;  %v513_v41 = vmul.f32 0.01, %v450_v40 }
 0x120   : > { %v529_v36 = vsel %vm497_vm1, %v450_v40, %v513_v41 }
 0x121   : > { %545 = vst [vmem:[%s1019_s9] sm:$0xff] %v529_v36 }
 0x123   : > { %v452_v42 = vpop.f32.mrf.mxu1 }
 0x124   : > { %v453_v43 = vadd.f32 %v1014_v38, %v452_v42 }
 0x126   : > { %vm498_vm2 = vcmp.gt.f32.partialorder %v453_v43, 0.0  ;;  %v514_v44 = vmul.f32 0.01, %v453_v43 }
 0x128   : > { %v530_v45 = vsel %vm498_vm2, %v453_v43, %v514_v44 }
 0x129   : > { %546 = vst [vmem:[%s1019_s9 + $0x8] sm:$0xff] %v530_v45 }
 0x12b   : > { %v455_v46 = vpop.f32.mrf.mxu1 }
 0x12c   : > { %v456_v47 = vadd.f32 %v1014_v38, %v455_v46 }
 0x12e   : > { %vm499_vm3 = vcmp.gt.f32.partialorder %v456_v47, 0.0  ;;  %v515_v48 = vmul.f32 0.01, %v456_v47 }
 0x130   : > { %v531_v49 = vsel %vm499_vm3, %v456_v47, %v515_v48 }
 0x131   : > { %547 = vst [vmem:[%s1019_s9 + $0x10] sm:$0xff] %v531_v49 }
 0x133   : > { %v458_v50 = vpop.f32.mrf.mxu1 }
 0x134   : > { %v459_v51 = vadd.f32 %v1014_v38, %v458_v50 }
 0x136   : > { %vm500_vm4 = vcmp.gt.f32.partialorder %v459_v51, 0.0  ;;  %v516_v52 = vmul.f32 0.01, %v459_v51 }
 0x138   : > { %v532_v53 = vsel %vm500_vm4, %v459_v51, %v516_v52 }
 0x139   : > { %548 = vst [vmem:[%s1019_s9 + $0x18] sm:$0xff] %v532_v53 }
 0x13b   : > { %v461_v54 = vpop.f32.mrf.mxu1 }
 0x13c   : > { %v462_v55 = vadd.f32 %v1014_v38, %v461_v54 }
 0x13e   : > { %vm501_vm5 = vcmp.gt.f32.partialorder %v462_v55, 0.0  ;;  %v517_v56 = vmul.f32 0.01, %v462_v55 }
 0x140   : > { %v533_v57 = vsel %vm501_vm5, %v462_v55, %v517_v56 }
 0x141   : > { %549 = vst [vmem:[%s1019_s9 + $0x20] sm:$0xff] %v533_v57 }
 0x143   : > { %v464_v58 = vpop.f32.mrf.mxu1 }
 0x144   : > { %v465_v59 = vadd.f32 %v1014_v38, %v464_v58 }
 0x146   : > { %vm502_vm6 = vcmp.gt.f32.partialorder %v465_v59, 0.0  ;;  %v518_v60 = vmul.f32 0.01, %v465_v59 }
 0x147   : > { %v491_v5 = vpop.f32.mrf.mxu3 }
 0x148   : > { %v534_v61 = vsel %vm502_vm6, %v465_v59, %v518_v60  ;;  %v492_v7 = vadd.f32 %v1014_v38, %v491_v5 }
 0x149   : > { %550 = vst [vmem:[%s1019_s9 + $0x28] sm:$0xff] %v534_v61 }
 0x14a   : > { %vm511_vm9 = vcmp.gt.f32.partialorder %v492_v7, 0.0  ;;  %v527_v8 = vmul.f32 0.01, %v492_v7 }
 0x14b   : > { %v467_v62 = vpop.f32.mrf.mxu1 }
 0x14c   : > { %v468_v63 = vadd.f32 %v1014_v38, %v467_v62  ;;  %v543_v11 = vsel %vm511_vm9, %v492_v7, %v527_v8 }
 0x14d   : > { %559 = vst [vmem:[%s1019_s9 + $0x70] sm:$0xff] %v543_v11 }
 0x14e   : > { %vm503_vm7 = vcmp.gt.f32.partialorder %v468_v63, 0.0  ;;  %v519_v0 = vmul.f32 0.01, %v468_v63 }
 0x14f   : > { %v494_v13 = vpop.f32.mrf.mxu3 }
 0x150   : > { %v535_v1 = vsel %vm503_vm7, %v468_v63, %v519_v0  ;;  %v495_v15 = vadd.f32 %v1014_v38, %v494_v13 }
 0x151   : > { %551 = vst [vmem:[%s1019_s9 + $0x30] sm:$0xff] %v535_v1 }
 0x152   : > { %vm512_vm11 = vcmp.gt.f32.partialorder %v495_v15, 0.0  ;;  %v528_v16 = vmul.f32 0.01, %v495_v15 }
 0x154   : > { %v544_v19 = vsel %vm512_vm11, %v495_v15, %v528_v16 }
 0x155   : > { %560 = vst [vmem:[%s1019_s9 + $0x78] sm:$0xff] %v544_v19 }
 0x159   : > { %v470_v2 = vpop.f32.mrf.mxu2 }
 0x15a   : > { %v471_v3 = vadd.f32 %v1014_v38, %v470_v2 }
 0x15c   : > { %vm504_vm8 = vcmp.gt.f32.partialorder %v471_v3, 0.0  ;;  %v520_v4 = vmul.f32 0.01, %v471_v3 }
 0x15e   : > { %v536_v6 = vsel %vm504_vm8, %v471_v3, %v520_v4 }
 0x15f   : > { %552 = vst [vmem:[%s1019_s9 + $0x38] sm:$0xff] %v536_v6 }
 0x161   : > { %v473_v9 = vpop.f32.mrf.mxu2 }
 0x162   : > { %v474_v10 = vadd.f32 %v1014_v38, %v473_v9 }
 0x164   : > { %vm505_vm10 = vcmp.gt.f32.partialorder %v474_v10, 0.0  ;;  %v521_v12 = vmul.f32 0.01, %v474_v10 }
 0x166   : > { %v537_v14 = vsel %vm505_vm10, %v474_v10, %v521_v12 }
 0x167   : > { %553 = vst [vmem:[%s1019_s9 + $0x40] sm:$0xff] %v537_v14 }
 0x169   : > { %v476_v17 = vpop.f32.mrf.mxu2 }
 0x16a   : > { %v477_v18 = vadd.f32 %v1014_v38, %v476_v17 }
 0x16c   : > { %vm506_vm12 = vcmp.gt.f32.partialorder %v477_v18, 0.0  ;;  %v522_v20 = vmul.f32 0.01, %v477_v18 }
 0x16e   : > { %v538_v21 = vsel %vm506_vm12, %v477_v18, %v522_v20 }
 0x16f   : > { %554 = vst [vmem:[%s1019_s9 + $0x48] sm:$0xff] %v538_v21 }
 0x171   : > { %v479_v22 = vpop.f32.mrf.mxu2 }
 0x172   : > { %v480_v23 = vadd.f32 %v1014_v38, %v479_v22 }
 0x174   : > { %vm507_vm13 = vcmp.gt.f32.partialorder %v480_v23, 0.0  ;;  %v523_v24 = vmul.f32 0.01, %v480_v23 }
 0x176   : > { %v539_v25 = vsel %vm507_vm13, %v480_v23, %v523_v24 }
 0x177   : > { %555 = vst [vmem:[%s1019_s9 + $0x50] sm:$0xff] %v539_v25 }
 0x179   : > { %v482_v26 = vpop.f32.mrf.mxu2 }
 0x17a   : > { %v483_v27 = vadd.f32 %v1014_v38, %v482_v26 }
 0x17c   : > { %vm508_vm14 = vcmp.gt.f32.partialorder %v483_v27, 0.0  ;;  %v524_v28 = vmul.f32 0.01, %v483_v27 }
 0x17e   : > { %v540_v29 = vsel %vm508_vm14, %v483_v27, %v524_v28 }
 0x17f   : > { %556 = vst [vmem:[%s1019_s9 + $0x58] sm:$0xff] %v540_v29 }
 0x181   : > { %v485_v30 = vpop.f32.mrf.mxu2 }
 0x182   : > { %v486_v31 = vadd.f32 %v1014_v38, %v485_v30 }
 0x184   : > { %vm509_vm15 = vcmp.gt.f32.partialorder %v486_v31, 0.0  ;;  %v525_v32 = vmul.f32 0.01, %v486_v31 }
 0x186   : > { %v541_v33 = vsel %vm509_vm15, %v486_v31, %v525_v32 }
 0x187   : > { %557 = vst [vmem:[%s1019_s9 + $0x60] sm:$0xff] %v541_v33 }
 0x189   : > { %v488_v34 = vpop.f32.mrf.mxu2 }
 0x18a   : > { %v489_v35 = vadd.f32 %v1014_v38, %v488_v34 }
 0x18c   : > { %vm510_vm0 = vcmp.gt.f32.partialorder %v489_v35, 0.0  ;;  %v526_v37 = vmul.f32 0.01, %v489_v35 }
 0x18e   : > { %v542_v39 = vsel %vm510_vm0, %v489_v35, %v526_v37 }
 0x18f   : > { %558 = vst [vmem:[%s1019_s9 + $0x68] sm:$0xff] %v542_v39 }
 0x190   : > { %774 = shalt.err (!%p771_p3)
}
 0x191   : > { %s811_s30 = smov 128   ;;  %s812_s8 = smov 8  }
 0x192   : > { %704 = dma.vmem_to_hbm [thread:$0]  (%p881_p5), %s575_s14, 2048, %s577_s15, %s562_s22, %s811_s30, %s811_s30, %s812_s8  }
 0x193 PF: > { %p710_p4 = scmp.ge.s32.totalorder %s809_s21, 2  ;;  %s591_s9 = sand.u32 1, %s797_s18  }
 0x194   : > { %s592_s10 = scalar_lea.sflag [#allocation3], %s591_s9 }
 0x195   : > { %p707_p7 = pnand %p710_p4, %p885_p6 }
 0x197   : > { %p708_p8 = pneg %p707_p7 }
 0x199   : > { %792 = dma.done.wait (%p708_p8), %s592_s10, 2048  }
 0x19a   : > { %794 = vsyncadd (%p708_p8), %s592_s10, 4294965248  ;;  %p15_p9 = scmp.ge.s32.totalorder %s868_s24, 4   ;;  %s1094_s18 = smov %s801_s19 }
 0x19b   : > { %s1095_s19 = smov %s805_s20  ;;  %s1096_s20 = smov %s879_s27 }
 0x19c   : > { %s1097_s21 = smov %s868_s24  ;;  %17 = sbr.rel (!%p15_p9) target bundleno = 3 (0x3), region = 75 }
 0x1a1   :  { %598 = vsyncpa [#allocation3], 1 }
 0x1a2   :  { %600 = vsyncpa [#allocation3 + $0x1], 1 }

</bundles_post_ra>
